<compile_context>
chip_gen: v7x
topology: tpu7x:2x2x1
jax: 0.10.0
libtpu: 0.0.40
codegen_flags: <defaults>
</compile_context>

<pallas_src>
import functools

import jax
import jax.numpy as jnp
from jax.experimental import pallas as pl
from jax.experimental.pallas import tpu as pltpu

LANE = 128
SUBLANE = 8
MATMUL_DTYPE = jnp.bfloat16  # dot operands; accumulation + elementwise stay f32


def _round_up(a, b):
    return (a + b - 1) // b * b


def _pad2d(a, rows, cols, dtype):
    """Cast + zero-pad a 2-D array to (rows, cols); no-op scatter if aligned."""
    a = a.astype(dtype)
    if a.shape == (rows, cols):
        return a
    return jnp.zeros((rows, cols), dtype).at[: a.shape[0], : a.shape[1]].set(a)


def _mlp_kernel(x_ref, w1_ref, b1_ref, w2_ref, b2_ref, out_ref):
    """Inference path: logits only (no labels, no CE math)."""
    h = jnp.dot(x_ref[...], w1_ref[...], preferred_element_type=jnp.float32)
    h = jnp.maximum(h + b1_ref[...], 0.0)                      # bias + ReLU in f32
    logits = jnp.dot(h.astype(w2_ref.dtype), w2_ref[...],
                     preferred_element_type=jnp.float32)
    out_ref[...] = logits + b2_ref[...]                        # (TB, 128) lane-dense


def _mlp_ce_kernel(x_ref, y_ref, w1_ref, b1_ref, w2_ref, b2_ref, out_ref, *,
                   n_classes):
    """Training path: logits + per-row NLL packed into one (TB, 128) slab.

    Lanes [0, n_classes)   : logits
    Lane  n_classes        : per-row NLL (cross-entropy before the mean)
    Lanes (n_classes, 128) : padding (never read by the wrapper)
    """
    h = jnp.dot(x_ref[...], w1_ref[...], preferred_element_type=jnp.float32)
    h = jnp.maximum(h + b1_ref[...], 0.0)
    logits = jnp.dot(h.astype(w2_ref.dtype), w2_ref[...],
                     preferred_element_type=jnp.float32)
    logits = logits + b2_ref[...]                              # (TB, 128) f32

    lane = jax.lax.broadcasted_iota(jnp.int32, logits.shape, 1)
    class_mask = lane < n_classes

    # numerically-stable log-sum-exp over the real classes only
    masked = jnp.where(class_mask, logits, jnp.float32(-1e30))
    m = jnp.max(masked, axis=-1, keepdims=True)
    lse = m + jnp.log(jnp.sum(jnp.exp(masked - m), axis=-1, keepdims=True))

    labels = y_ref[...]                                        # (TB, 1) int32
    target = jnp.sum(jnp.where(lane == labels, logits, 0.0),
                     axis=-1, keepdims=True)
    nll = lse - target                                         # (TB, 1)

    # pack NLL into lane `n_classes` of the lane-dense slab (single wide store)
    out_ref[...] = jnp.where(lane == n_classes, nll, logits)


def single_layer_perceptron_forward(x, params, y=None, *, tile_b=128):
    """Mirrors SingleLayerPerceptron.forward: returns (logits, loss)."""
    w1, b1, w2, b2 = params
    B, n_in = x.shape
    n_hidden = w1.shape[1]
    n_classes = w2.shape[1]
    assert n_classes < LANE, "NLL is stashed in lane `n_classes` of a 128-wide slab"

    # MXU/layout-friendly padded sizes
    k_pad = _round_up(n_in, SUBLANE)
    h_pad = _round_up(n_hidden, LANE)
    c_pad = LANE
    tb = min(tile_b, _round_up(B, SUBLANE))
    b_pad = _round_up(B, tb)
    num_tiles = pl.cdiv(b_pad, tb)

    # zero-pad + cast once in the wrapper (pure layout plumbing)
    xp = _pad2d(x, b_pad, k_pad, MATMUL_DTYPE)
    w1p = _pad2d(w1, k_pad, h_pad, MATMUL_DTYPE)
    b1p = _pad2d(b1.reshape(1, n_hidden), 1, h_pad, jnp.float32)
    w2p = _pad2d(w2, h_pad, c_pad, MATMUL_DTYPE)
    b2p = _pad2d(b2.reshape(1, n_classes), 1, c_pad, jnp.float32)

    x_spec = pl.BlockSpec((tb, k_pad), lambda i: (i, 0))
    w1_spec = pl.BlockSpec((k_pad, h_pad), lambda i: (0, 0))   # resident
    b1_spec = pl.BlockSpec((1, h_pad), lambda i: (0, 0))       # resident
    w2_spec = pl.BlockSpec((h_pad, c_pad), lambda i: (0, 0))   # resident
    b2_spec = pl.BlockSpec((1, c_pad), lambda i: (0, 0))       # resident
    out_spec = pl.BlockSpec((tb, c_pad), lambda i: (i, 0))     # lane-dense slab

    cparams = pltpu.CompilerParams(
        dimension_semantics=("parallel",),          # shard batch tiles over TCs
        vmem_limit_bytes=32 * 1024 * 1024,          # safe on v5e/v6e/v7x
    )

    if y is None:
        logits_pad = pl.pallas_call(
            _mlp_kernel,
            out_shape=jax.ShapeDtypeStruct((b_pad, c_pad), jnp.float32),
            grid=(num_tiles,),
            in_specs=[x_spec, w1_spec, b1_spec, w2_spec, b2_spec],
            out_specs=out_spec,
            compiler_params=cparams,
        )(xp, w1p, b1p, w2p, b2p)
        return logits_pad[:B, :n_classes], None

    yp = jnp.zeros((b_pad, 1), jnp.int32).at[:B, 0].set(y.astype(jnp.int32))
    y_spec = pl.BlockSpec((tb, 1), lambda i: (i, 0))

    slab = pl.pallas_call(
        functools.partial(_mlp_ce_kernel, n_classes=n_classes),
        out_shape=jax.ShapeDtypeStruct((b_pad, c_pad), jnp.float32),
        grid=(num_tiles,),
        in_specs=[x_spec, y_spec, w1_spec, b1_spec, w2_spec, b2_spec],
        out_specs=out_spec,
        compiler_params=cparams,
    )(xp, yp, w1p, b1p, w2p, b2p)

    logits = slab[:B, :n_classes]
    # F.cross_entropy default reduction='mean'
    loss = jnp.mean(slab[:B, n_classes])
    return logits, loss


def init_params(key, n_in, n_hidden, n_classes):
    """Deterministic init matching the PyTorch module's parameter shapes
    (nn.Linear(n_in, n_hidden), nn.Linear(n_hidden, n_classes)); weights are
    stored as (in, out) so the kernel does x @ W + b (== x @ W_pt.T + b)."""
    k1, k2, k3, k4 = jax.random.split(key, 4)
    lim1 = 1.0 / jnp.sqrt(n_in)
    lim2 = 1.0 / jnp.sqrt(n_hidden)
    w1 = jax.random.uniform(k1, (n_in, n_hidden), jnp.float32, -lim1, lim1)
    b1 = jax.random.uniform(k2, (1, n_hidden), jnp.float32, -lim1, lim1)
    w2 = jax.random.uniform(k3, (n_hidden, n_classes), jnp.float32, -lim2, lim2)
    b2 = jax.random.uniform(k4, (1, n_classes), jnp.float32, -lim2, lim2)
    return (w1, b1, w2, b2)


# TODO(synk): add_optimizer / torch.optim.Adam (training-state management) has
# no forward-pass Pallas equivalent and is intentionally not implemented.


if __name__ == "__main__":
    # Iris-like shapes: 4 input features, 32 hidden units, 3 classes, batch 8.
    B, n_in, n_hidden, n_classes = 8, 4, 32, 3

    key = jax.random.PRNGKey(0)
    kx, ky, kp = jax.random.split(key, 3)
    x = jax.random.normal(kx, (B, n_in), dtype=jnp.float32)
    y = jax.random.randint(ky, (B,), 0, n_classes, dtype=jnp.int32)
    params = init_params(kp, n_in, n_hidden, n_classes)

    # path without labels: (logits, None)
    logits_only, loss_none = single_layer_perceptron_forward(x, params, y=None)
    jax.block_until_ready(logits_only)
    assert loss_none is None

    # path with labels: (logits, mean cross-entropy loss)
    logits, loss = single_layer_perceptron_forward(x, params, y=y)
    jax.block_until_ready((logits, loss))

    # pure-JAX reference with matching bf16-operand / f32-accumulate matmuls
    w1, b1, w2, b2 = params
    h_ref = jnp.maximum(
        jnp.dot(x.astype(MATMUL_DTYPE), w1.astype(MATMUL_DTYPE),
                preferred_element_type=jnp.float32) + b1, 0.0)
    logits_ref = jnp.dot(h_ref.astype(MATMUL_DTYPE), w2.astype(MATMUL_DTYPE),
                         preferred_element_type=jnp.float32) + b2
    loss_ref = jnp.mean(
        jax.nn.logsumexp(logits_ref, axis=-1)
        - jnp.take_along_axis(logits_ref, y[:, None], axis=-1)[:, 0]
    )

    assert jnp.allclose(logits_only, logits_ref, atol=1e-3, rtol=1e-3), "logits (no-label) mismatch"
    assert jnp.allclose(logits, logits_ref, atol=1e-3, rtol=1e-3), "logits mismatch"
    assert jnp.allclose(loss, loss_ref, atol=1e-3, rtol=1e-3), "loss mismatch"

    print("KERNEL_OK")
</pallas_src>

<mosaic_0001>
module attributes {stable_mosaic.version = 11 : i64} {
  func.func @_mlp_kernel(%arg0: i32, %arg1: memref<8x8xbf16, #tpu.memory_space<vmem>>, %arg2: memref<8x128xbf16, #tpu.memory_space<vmem>>, %arg3: memref<1x128xf32, #tpu.memory_space<vmem>>, %arg4: memref<128x128xbf16, #tpu.memory_space<vmem>>, %arg5: memref<1x128xf32, #tpu.memory_space<vmem>>, %arg6: memref<8x128xf32, #tpu.memory_space<vmem>>) attributes {dimension_semantics = [#tpu.dimension_semantics<parallel>], iteration_bounds = array<i64: 1>, scalar_prefetch = 0 : i64, scratch_operands = 0 : i64, tpu.core_type = #tpu.core_type<tc>, window_params = [{transform_indices = @transform_0, window_bounds = array<i64: 8, 8>}, {pipeline_mode = #tpu.pipeline_mode<synchronous>, transform_indices = @transform_1, window_bounds = array<i64: 8, 128>}, {pipeline_mode = #tpu.pipeline_mode<synchronous>, transform_indices = @transform_2, window_bounds = array<i64: 1, 128>}, {pipeline_mode = #tpu.pipeline_mode<synchronous>, transform_indices = @transform_3, window_bounds = array<i64: 128, 128>}, {pipeline_mode = #tpu.pipeline_mode<synchronous>, transform_indices = @transform_4, window_bounds = array<i64: 1, 128>}, {transform_indices = @transform_5, window_bounds = array<i64: 8, 128>}]} {
    %c0 = arith.constant 0 : index
    %c0_0 = arith.constant 0 : index
    %0 = vector.load %arg1[%c0, %c0_0] : memref<8x8xbf16, #tpu.memory_space<vmem>>, vector<8x8xbf16>
    %c0_1 = arith.constant 0 : index
    %c0_2 = arith.constant 0 : index
    %1 = vector.load %arg2[%c0_1, %c0_2] : memref<8x128xbf16, #tpu.memory_space<vmem>>, vector<8x128xbf16>
    %cst = arith.constant dense<0.000000e+00> : vector<8x128xf32>
    %2 = tpu.matmul %0, %1, %cst {dimension_numbers = #tpu.dot_dimension_numbers<[1], [0], [0], [1], [0, 0, 1, 1], [], []>} : vector<8x8xbf16>, vector<8x128xbf16>, vector<8x128xf32> -> vector<8x128xf32>
    %c0_3 = arith.constant 0 : index
    %c0_4 = arith.constant 0 : index
    %3 = vector.load %arg3[%c0_3, %c0_4] : memref<1x128xf32, #tpu.memory_space<vmem>>, vector<1x128xf32>
    %4 = vector.broadcast %3 : vector<1x128xf32> to vector<8x128xf32>
    %5 = arith.addf %2, %4 : vector<8x128xf32>
    %cst_5 = arith.constant 0.000000e+00 : f32
    %6 = vector.broadcast %cst_5 : f32 to vector<8x128xf32>
    %7 = arith.maximumf %5, %6 : vector<8x128xf32>
    %8 = arith.truncf %7 : vector<8x128xf32> to vector<8x128xbf16>
    %c0_6 = arith.constant 0 : index
    %c0_7 = arith.constant 0 : index
    %9 = vector.load %arg4[%c0_6, %c0_7] : memref<128x128xbf16, #tpu.memory_space<vmem>>, vector<128x128xbf16>
    %cst_8 = arith.constant dense<0.000000e+00> : vector<8x128xf32>
    %10 = tpu.matmul %8, %9, %cst_8 {dimension_numbers = #tpu.dot_dimension_numbers<[1], [0], [0], [1], [0, 0, 1, 1], [], []>} : vector<8x128xbf16>, vector<128x128xbf16>, vector<8x128xf32> -> vector<8x128xf32>
    %c0_9 = arith.constant 0 : index
    %c0_10 = arith.constant 0 : index
    %11 = vector.load %arg5[%c0_9, %c0_10] : memref<1x128xf32, #tpu.memory_space<vmem>>, vector<1x128xf32>
    %12 = vector.broadcast %11 : vector<1x128xf32> to vector<8x128xf32>
    %13 = arith.addf %10, %12 : vector<8x128xf32>
    %c0_11 = arith.constant 0 : index
    %c0_12 = arith.constant 0 : index
    %14 = vector.load %arg6[%c0_11, %c0_12] : memref<8x128xf32, #tpu.memory_space<vmem>>, vector<8x128xf32>
    tpu.vector_store %arg6[%c0_11, %c0_12], %13 {strides = array<i32>} : memref<8x128xf32, #tpu.memory_space<vmem>>, vector<8x128xf32>,
    return
  }
  func.func @transform_0(%arg0: i32) -> (i32, i32) {
    %c0_i32 = arith.constant 0 : i32
    %c0_i32_0 = arith.constant 0 : i32
    return %arg0, %c0_i32 : i32, i32
  }
  func.func @transform_1(%arg0: i32) -> (i32, i32) {
    %c0_i32 = arith.constant 0 : i32
    %c0_i32_0 = arith.constant 0 : i32
    %c0_i32_1 = arith.constant 0 : i32
    return %c0_i32, %c0_i32_0 : i32, i32
  }
  func.func @transform_2(%arg0: i32) -> (i32, i32) {
    %c0_i32 = arith.constant 0 : i32
    %c0_i32_0 = arith.constant 0 : i32
    %c0_i32_1 = arith.constant 0 : i32
    return %c0_i32, %c0_i32_0 : i32, i32
  }
  func.func @transform_3(%arg0: i32) -> (i32, i32) {
    %c0_i32 = arith.constant 0 : i32
    %c0_i32_0 = arith.constant 0 : i32
    %c0_i32_1 = arith.constant 0 : i32
    return %c0_i32, %c0_i32_0 : i32, i32
  }
  func.func @transform_4(%arg0: i32) -> (i32, i32) {
    %c0_i32 = arith.constant 0 : i32
    %c0_i32_0 = arith.constant 0 : i32
    %c0_i32_1 = arith.constant 0 : i32
    return %c0_i32, %c0_i32_0 : i32, i32
  }
  func.func @transform_5(%arg0: i32) -> (i32, i32) {
    %c0_i32 = arith.constant 0 : i32
    %c0_i32_0 = arith.constant 0 : i32
    return %arg0, %c0_i32 : i32, i32
  }
}

</mosaic_0001>

<bundles_post_ra>
// kernel: tpu_custom_call.1
= control target key start
LH: loop header
LB: loop body
LE: loop exit
PB: predicated region body
PF: predicated region fallthrough
CT: control target
= control target key end

     0   :  { %10 = vsyncpa [#allocation3], 0  ;;  %s496_s0 = inlined_call_operand.hbm [shape: bf16[8,8], index: 0, kind: input, shape index: {}]   ;;  %s497_s1 = inlined_call_operand.hbm [shape: bf16[8,128], index: 1, kind: input, shape index: {}]   ;;  %s498_s2 = inlined_call_operand.vmem [shape: f32[1,128], index: 2, kind: input, shape index: {}]   ;;  %s499_s3 = inlined_call_operand.hbm [shape: bf16[128,128], index: 3, kind: input, shape index: {}]   ;;  %s500_s4 = inlined_call_operand.vmem [shape: f32[1,128], index: 4, kind: input, shape index: {}]   ;;  %s501_s5 = inlined_call_operand.hbm [shape: f32[8,128], index: 5, kind: output, shape index: {}]  }
   0x1   :  { %11 = vsyncpa [#allocation6], 0 }
   0x2   :  { %12 = vsyncpa [#allocation4], 0  ;;  %s404_s18 = smov [#allocation5]   ;;  %s405_s20 = smov [#allocation2]  }
   0x3   :  { %s29_s19 = sshll.u32 %s404_s18, 4  ;;  %s19_s21 = sshll.u32 %s405_s20, 4  ;;  %s30_s19 = int_to_ptr.vmem [resolvable:$true] %s29_s19  ;;  %s20_s21 = int_to_ptr.vmem [resolvable:$true] %s19_s21 }
   0x4   :  { %s310_s24 = scalar_lea.hbm %s497_s1, 64 }
   0x5   :  { %p311_p0 = scmp.ne.s32.totalorder %s497_s1, %s310_s24  ;;  %p314_p1 = scmp.lt.u32.totalorder %s310_s24, %s497_s1 }
   0x7   :  { %p316_p2 = pnand %p314_p1, %p311_p0 }
   0x9   :  { %319 = shalt.err (!%p316_p2)
}
   0xa   :  { %s320_s29 = scalar_lea.vmem %s30_s19, 64  ;;  %p325_p4 = scmp.lt.s32.totalorder %s30_s19, %s30_s19 }
   0xb   :  { %p321_p3 = scmp.ne.s32.totalorder %s30_s19, %s320_s29  ;;  %p326_p5 = scmp.lt.s32.totalorder %s320_s29, %s320_s29 }
   0xd   :  { %p327_p6 = por %p326_p5, %p325_p4 }
   0xf   :  { %p328_p7 = pnand %p327_p6, %p321_p3 }
  0x11   :  { %331 = shalt.err (!%p328_p7)
}
  0x12   :  { %32 = dma.hbm_to_vmem [thread:$0]  %s497_s1, 64, %s30_s19, [#allocation6]  }
  0x13   :  { %s332_s9 = scalar_lea.hbm %s496_s0, 64 }
  0x14   :  { %p333_p8 = scmp.ne.s32.totalorder %s496_s0, %s332_s9  ;;  %p336_p9 = scmp.lt.u32.totalorder %s332_s9, %s496_s0 }
  0x16   :  { %p338_p10 = pnand %p336_p9, %p333_p8 }
  0x18   :  { %341 = shalt.err (!%p338_p10)
}
  0x19   :  { %s342_s14 = scalar_lea.vmem %s20_s21, 64  ;;  %p347_p12 = scmp.lt.s32.totalorder %s20_s21, %s20_s21 }
  0x1a   :  { %p343_p11 = scmp.ne.s32.totalorder %s20_s21, %s342_s14  ;;  %p348_p13 = scmp.lt.s32.totalorder %s342_s14, %s342_s14 }
  0x1c   :  { %p349_p0 = por %p348_p13, %p347_p12 }
  0x1e   :  { %p350_p1 = pnand %p349_p0, %p343_p11 }
  0x20   :  { %353 = shalt.err (!%p350_p1)
}
  0x21   :  { %22 = dma.hbm_to_vmem [thread:$0]  %s496_s0, 64, %s20_s21, [#allocation3]  }
  0x22   :  { %s406_s16 = smov [#allocation7]   ;;  %s354_s20 = scalar_lea.hbm %s499_s3, 1024 }
  0x23   :  { %s40_s17 = sshll.u32 %s406_s16, 4  ;;  %p355_p2 = scmp.ne.s32.totalorder %s499_s3, %s354_s20  ;;  %s41_s17 = int_to_ptr.vmem [resolvable:$true] %s40_s17 }
  0x24   :  { %p358_p3 = scmp.lt.u32.totalorder %s354_s20, %s499_s3 }
  0x26   :  { %p360_p4 = pnand %p358_p3, %p355_p2 }
  0x28   :  { %363 = shalt.err (!%p360_p4)
}
  0x29   :  { %s364_s26 = scalar_lea.vmem %s41_s17, 1024  ;;  %p369_p6 = scmp.lt.s32.totalorder %s41_s17, %s41_s17 }
  0x2a   :  { %p365_p5 = scmp.ne.s32.totalorder %s41_s17, %s364_s26  ;;  %p370_p7 = scmp.lt.s32.totalorder %s364_s26, %s364_s26 }
  0x2c   :  { %p371_p8 = por %p370_p7, %p369_p6 }
  0x2e   :  { %p372_p9 = pnand %p371_p8, %p365_p5 }
  0x30   :  { %375 = shalt.err (!%p372_p9)
}
  0x31   :  { %s407_s0 = smov 64   ;;  %s408_s21 = smov 4  }
  0x32   :  { %46 = dma.hbm_to_vmem [thread:$0]  %s499_s3, 1024, %s41_s17, [#allocation6], %s407_s0, %s407_s0, %s408_s21  }
  0x33   :  { %398 = dma.done.wait [#allocation3], 64  }
  0x34   :  { %399 = vsyncadd [#allocation3], 4294967232 }
  0x35   :  { %400 = dma.done.wait [#allocation6], 1088  }
  0x36   :  { %401 = vsyncadd [#allocation6], 4294966208  ;;  %v409_v0 = vmov 0.0   ;;  %vm410_vm0 = vmmov 0   ;;  %vm72_vm1 = vcmask 1043456   ;;  %vm68_vm2 = vcmask 64512  }
  0x37   :  { %268 = vmatprep.subr.bf16.mxu0 %v409_v0  ;;  %270 = vmatprep.mubr.msk.bf16.mxu0 %vm410_vm0, %v409_v0  ;;  %v60_v1 = vld [vmem:[#allocation5] sm:$0xf]  ;;  %v302_v3 = vld [vmem:[#allocation7] sm:$0xff]   ;;  %v59_v4 = vld [vmem:[#allocation2] sm:$0xf]  ;;  %s411_s7 = smov [#allocation8]  }
  0x38   :  { %274 = vmatprep.subr.bf16.mxu1 %v409_v0  ;;  %290 = vmatprep.mubr.msk.bf16.mxu1 %vm410_vm0, %v409_v0  ;;  %v74_v2 = vsel %vm72_vm1, %v60_v1, 0  ;;  %v303_v5 = vld [vmem:[#allocation7 + $0x8] sm:$0xff]   ;;  %v304_v6 = vld [vmem:[#allocation7 + $0x10] sm:$0xff]   ;;  %v305_v7 = vld [vmem:[#allocation7 + $0x18] sm:$0xff]   ;;  %s236_s8 = sshll.u32 %s411_s7, 4  ;;  %s237_s8 = int_to_ptr.vmem [resolvable:$true] %s236_s8 }
  0x39   :  { %269 = vmatpush3.bf16.msra.mxu0 %v74_v2  ;;  %275 = vmatpush3.bf16.msra.mxu1 %v302_v3  ;;  %v306_v8 = vld [vmem:[#allocation7 + $0x20] sm:$0xff]   ;;  %v307_v9 = vld [vmem:[#allocation7 + $0x28] sm:$0xff]   ;;  %v308_v10 = vld [vmem:[#allocation7 + $0x30] sm:$0xff]   ;;  %p381_p11 = scmp.lt.s32.totalorder %s237_s8, %s237_s8 }
  0x3a   :  { %276 = vmatprep.subr.bf16.mxu1 %v409_v0  ;;  %v309_v11 = vld [vmem:[#allocation7 + $0x38] sm:$0xff]  }
  0x3b   :  { %v246_v12 = vld [vmem:[%s498_s2] ss:$0 sm:$0xff]  ;;  %s376_s2 = scalar_lea.vmem %s237_s8, 128 }
  0x3c   :  { %271 = vmatmul.mubr.msk.bf16.vlgmr.msra.gmra.mrb[0].mxu0 %vm68_vm2, %v59_v4  ;;  %v248_v20 = vld [vmem:[%s500_s4] ss:$0 sm:$0xff]  ;;  %p377_p10 = scmp.ne.s32.totalorder %s237_s8, %s376_s2  ;;  %p382_p12 = scmp.lt.s32.totalorder %s376_s2, %s376_s2 }
  0x3d   :  { %277 = vmatpush3.bf16.msra.mxu1 %v303_v5 }
  0x3e   :  { %278 = vmatprep.subr.bf16.mxu1 %v409_v0  ;;  %p383_p13 = por %p382_p12, %p381_p11 }
  0x40   :  { %p384_p0 = pnand %p383_p13, %p377_p10 }
  0x41   :  { %279 = vmatpush3.bf16.msra.mxu1 %v304_v6 }
  0x42   :  { %280 = vmatprep.subr.bf16.mxu1 %v409_v0 }
  0x45   :  { %281 = vmatpush3.bf16.msra.mxu1 %v305_v7 }
  0x46   :  { %282 = vmatprep.subr.bf16.mxu1 %v409_v0 }
  0x49   :  { %283 = vmatpush3.bf16.msra.mxu1 %v306_v8 }
  0x4a   :  { %284 = vmatprep.subr.bf16.mxu1 %v409_v0 }
  0x4d   :  { %285 = vmatpush3.bf16.msra.mxu1 %v307_v9 }
  0x4e   :  { %286 = vmatprep.subr.bf16.mxu1 %v409_v0 }
  0x51   :  { %287 = vmatpush3.bf16.msra.mxu1 %v308_v10 }
  0x52   :  { %288 = vmatprep.subr.bf16.mxu1 %v409_v0 }
  0x55   :  { %289 = vmatpush3.bf16.msra.mxu1 %v309_v11 }
 0x10f   :  { %v110_v13 = vpop.f32.mrb[0].mxu0 }
 0x110   :  { %v111_v14 = vadd.f32 %v246_v12, %v110_v13  ;;  %v272_v15 = vpop.f32.mrb[1].mxu0 }
 0x111   :  { %v113_v16 = vpop.f32.mrb[2].mxu0 }
 0x112   :  { %v116_v17 = vmax.f32 %v111_v14, 0.0  ;;  %v273_v18 = vpop.f32.mrb[3].mxu0 }
 0x114   :  { %v117_v19 = vpack.c.bf16 %v116_v17, %v116_v17 }
 0x116   :  { %291 = vmatmul.mubr.bf16.vlgmr.msra.gmra.mrb[0].mxu1 %v117_v19 }
 0x1e9   :  { %v223_v21 = vpop.f32.mrb[0].mxu1 }
 0x1ea   :  { %v224_v22 = vadd.f32 %v248_v20, %v223_v21  ;;  %v292_v23 = vpop.f32.mrb[1].mxu1 }
 0x1eb   :  { %v226_v24 = vpop.f32.mrb[2].mxu1 }
 0x1ec   :  { %229 = vst [vmem:[#allocation8] sm:$0xff] %v224_v22  ;;  %v293_v25 = vpop.f32.mrb[3].mxu1 }
 0x1ed   :  { %387 = shalt.err (!%p384_p0)
}
 0x1ee   :  { %s388_s4 = scalar_lea.hbm %s501_s5, 128 }
 0x1ef   :  { %p389_p1 = scmp.ne.s32.totalorder %s501_s5, %s388_s4  ;;  %p392_p2 = scmp.lt.u32.totalorder %s388_s4, %s501_s5 }
 0x1f1   :  { %p394_p3 = pnand %p392_p2, %p389_p1 }
 0x1f3   :  { %397 = shalt.err (!%p394_p3)
}
 0x1f4   :  { %239 = dma.vmem_to_hbm [thread:$0]  %s237_s8, 128, %s501_s5, [#allocation4]  }
 0x1f5   :  { %402 = dma.done.wait [#allocation4], 128  }
 0x1f6   :  { %403 = vsyncadd [#allocation4], 4294967168 }
 0x1f7   :  { %243 = vsyncpa [#allocation3], 1 }
 0x1f8   :  { %244 = vsyncpa [#allocation6], 1 }
 0x1f9   :  { %245 = vsyncpa [#allocation4], 1 }

</bundles_post_ra>
